<compile_context>
chip_gen: v5e
topology: v5e:2x2
jax: 0.10.0
libtpu: 0.0.40
codegen_flags: <defaults>
</compile_context>

<pallas_src>
import math

import jax
import jax.numpy as jnp
from jax import lax
from jax.experimental import pallas as pl
from jax.experimental.pallas import tpu as pltpu

_MIB = 1024 * 1024


def _still_classifier_kernel(x_ref, w_ref, b_ref, o_ref):
    # x_ref: (TM, H) VMEM   w_ref: (1, H) VMEM   b_ref: (1,) SMEM
    # o_ref: (1, 1, TM) VMEM  -- lane-dense row of logits for this tile.
    #
    # 'nd,md->nm': contract H (dim 1) of both operands.  The rhs-side H
    # contraction lowers to the MXU transposed weight push, so x is consumed
    # in its stored (TM, H) layout (no x^T copy) and the (1, TM) result is
    # already lane-dense for the store.
    acc = lax.dot_general(
        w_ref[...], x_ref[...],
        dimension_numbers=(((1,), (1,)), ((), ())),
        preferred_element_type=jnp.float32,
    )                                                   # (1, TM) f32
    b = b_ref[0]                                        # scalar bias from SMEM
    o_ref[...] = (acc + b)[None].astype(o_ref.dtype)    # (1, 1, TM)


def _chip_config():
    """Per-generation (x-tile target bytes, vmem limit, grid semantics)."""
    kind = ""
    try:
        kind = jax.devices()[0].device_kind.lower()
    except Exception:  # defensive: fall back to safe defaults
        pass
    if "v7" in kind or "tpu7" in kind or "7x" in kind:
        # 64 MiB physical VMEM; 2 TCs -> split the M axis across cores.
        return 12 * _MIB, 48 * _MIB, (pltpu.CORE_PARALLEL,)
    if "v6" in kind:
        # 128 MiB physical VMEM: bigger tiles amortize per-step overhead.
        return 16 * _MIB, 64 * _MIB, ("parallel",)
    # v5e and unknown chips: 8 MiB tiles, explicit 32 MiB scoped limit.
    return 8 * _MIB, 32 * _MIB, ("parallel",)


def _pick_block_m(m, h, itemsize, target_bytes):
    """Rows per x tile: ~target_bytes of x, preferring 1024-row (8*128) alignment."""
    rows = max(1, target_bytes // max(1, h * itemsize))
    if rows >= m:
        return m                       # single block == full array (always legal)
    for align in (1024, 128, 8):       # prefer lane-dense TM for the logits row
        if rows >= align:
            return (rows // align) * align
    return min(8, m)                   # pathologically large H fallback


def still_classifier(x, weight, bias):
    """Forward of StillClassifier: x @ weight.T + bias.

    x:      (..., H)
    weight: (1, H)   (PyTorch nn.Linear layout)
    bias:   (1,)
    returns (..., 1)
    """
    orig_shape = x.shape
    H = orig_shape[-1]
    x2d = x.reshape(-1, H)
    M = x2d.shape[0]
    dtype = x2d.dtype
    itemsize = jnp.dtype(dtype).itemsize

    target_bytes, vmem_limit, dim_semantics = _chip_config()
    TM = _pick_block_m(M, H, itemsize, target_bytes)
    num_tiles = pl.cdiv(M, TM)

    # NOTE: weight cast to x's dtype (f32 accumulation) -- standard
    # mixed-precision linear behavior; differs slightly from an f32-weight
    # reference when x is bf16.
    w2d = weight.reshape(1, H).astype(dtype)
    b1d = bias.reshape(1).astype(jnp.float32)

    flops = 2 * M * H
    bytes_accessed = (M * H + H) * itemsize + M * itemsize + 4

    out = pl.pallas_call(
        _still_classifier_kernel,
        out_shape=jax.ShapeDtypeStruct((num_tiles, 1, TM), dtype),
        grid_spec=pltpu.PrefetchScalarGridSpec(
            num_scalar_prefetch=0,
            grid=(num_tiles,),
            in_specs=[
                # Streamed activation tiles (double-buffered by Pallas).  The
                # last tile may be partial; its stale tail rows only produce
                # logits that are sliced off below.
                pl.BlockSpec((TM, H), lambda i: (i, 0)),
                # Weight row: constant index_map -> stays resident in VMEM.
                pl.BlockSpec((1, H), lambda i: (0, 0)),
                # Bias scalar in SMEM.
                pl.BlockSpec(memory_space=pltpu.MemorySpace.SMEM),
            ],
            out_specs=pl.BlockSpec((1, 1, TM), lambda i: (i, 0, 0)),
        ),
        compiler_params=pltpu.CompilerParams(
            dimension_semantics=dim_semantics,
            vmem_limit_bytes=vmem_limit,
        ),
        cost_estimate=pl.CostEstimate(
            flops=flops, transcendentals=0, bytes_accessed=bytes_accessed),
    )(x2d, w2d, b1d)

    out = out.reshape(num_tiles * TM)[:M].reshape(*orig_shape[:-1], 1)
    return out


def init_params(key, hidden_dim, dtype=jnp.float32):
    # Deterministic init mimicking nn.Linear default (uniform +/- 1/sqrt(fan_in)).
    kw, kb = jax.random.split(key)
    bound = 1.0 / math.sqrt(hidden_dim)
    weight = jax.random.uniform(kw, (1, hidden_dim), dtype, -bound, bound)
    bias = jax.random.uniform(kb, (1,), dtype, -bound, bound)
    return weight, bias


if __name__ == "__main__":
    key = jax.random.PRNGKey(0)
    k_x, k_x2, k_p = jax.random.split(key, 3)

    batch, seq, hidden = 2, 8, 32
    weight, bias = init_params(k_p, hidden)

    # Case 1: small aligned M (single full block).
    x = jax.random.normal(k_x, (batch, seq, hidden), jnp.float32)
    out = jax.block_until_ready(still_classifier(x, weight, bias))
    ref = x @ weight.T + bias
    assert out.shape == (batch, seq, 1), out.shape
    assert jnp.allclose(out, ref, atol=1e-4, rtol=1e-4), "mismatch vs reference (aligned)"

    # Case 2: ragged M (exercises the no-pad, full-dim / partial-block path).
    x2 = jax.random.normal(k_x2, (3, 5, hidden), jnp.float32)   # M = 15
    out2 = jax.block_until_ready(still_classifier(x2, weight, bias))
    ref2 = x2 @ weight.T + bias
    assert out2.shape == (3, 5, 1), out2.shape
    assert jnp.allclose(out2, ref2, atol=1e-4, rtol=1e-4), "mismatch vs reference (ragged)"

    print("KERNEL_OK")
</pallas_src>

<mosaic_0001>
module attributes {stable_mosaic.version = 11 : i64} {
  func.func @_still_classifier_kernel(%arg0: i32, %arg1: memref<16x32xf32, #tpu.memory_space<vmem>>, %arg2: memref<1x32xf32, #tpu.memory_space<vmem>>, %arg3: memref<1xf32, #tpu.memory_space<smem>>, %arg4: memref<1x1x16xf32, #tpu.memory_space<vmem>>) attributes {dimension_semantics = [#tpu.dimension_semantics<parallel>], iteration_bounds = array<i64: 1>, scalar_prefetch = 0 : i64, scratch_operands = 0 : i64, tpu.core_type = #tpu.core_type<tc>, window_params = [{transform_indices = @transform_0, window_bounds = array<i64: 16, 32>}, {pipeline_mode = #tpu.pipeline_mode<synchronous>, transform_indices = @transform_1, window_bounds = array<i64: 1, 32>}, {transform_indices = @transform_2, window_bounds = array<i64: 1>}, {transform_indices = @transform_3, window_bounds = array<i64: 1, 1, 16>}]} {
    %c0 = arith.constant 0 : index
    %c0_0 = arith.constant 0 : index
    %0 = vector.load %arg2[%c0, %c0_0] : memref<1x32xf32, #tpu.memory_space<vmem>>, vector<1x32xf32>
    %c0_1 = arith.constant 0 : index
    %c0_2 = arith.constant 0 : index
    %1 = vector.load %arg1[%c0_1, %c0_2] : memref<16x32xf32, #tpu.memory_space<vmem>>, vector<16x32xf32>
    %cst = arith.constant dense<0.000000e+00> : vector<1x16xf32>
    %2 = tpu.matmul %0, %1, %cst {dimension_numbers = #tpu.dot_dimension_numbers<[1], [1], [0], [0], [0, 0, 1, 0], [], []>} : vector<1x32xf32>, vector<16x32xf32>, vector<1x16xf32> -> vector<1x16xf32>
    %c0_3 = arith.constant 0 : index
    %3 = memref.load %arg3[%c0_3] : memref<1xf32, #tpu.memory_space<smem>>
    %4 = vector.broadcast %3 : f32 to vector<1x16xf32>
    %5 = arith.addf %2, %4 : vector<1x16xf32>
    %6 = vector.shape_cast %5 : vector<1x16xf32> to vector<1x1x16xf32>
    %c0_4 = arith.constant 0 : index
    %c0_5 = arith.constant 0 : index
    %c0_6 = arith.constant 0 : index
    %7 = vector.load %arg4[%c0_4, %c0_5, %c0_6] : memref<1x1x16xf32, #tpu.memory_space<vmem>>, vector<1x1x16xf32>
    tpu.vector_store %arg4[%c0_4, %c0_5, %c0_6], %6 {strides = array<i32>} : memref<1x1x16xf32, #tpu.memory_space<vmem>>, vector<1x1x16xf32>,
    return
  }
  func.func @transform_0(%arg0: i32) -> (i32, i32) {
    %c0_i32 = arith.constant 0 : i32
    %c0_i32_0 = arith.constant 0 : i32
    return %arg0, %c0_i32 : i32, i32
  }
  func.func @transform_1(%arg0: i32) -> (i32, i32) {
    %c0_i32 = arith.constant 0 : i32
    %c0_i32_0 = arith.constant 0 : i32
    %c0_i32_1 = arith.constant 0 : i32
    return %c0_i32, %c0_i32_0 : i32, i32
  }
  func.func @transform_2(%arg0: i32) -> i32 {
    %c0_i32 = arith.constant 0 : i32
    %c0_i32_0 = arith.constant 0 : i32
    return %c0_i32 : i32
  }
  func.func @transform_3(%arg0: i32) -> (i32, i32, i32) {
    %c0_i32 = arith.constant 0 : i32
    %c0_i32_0 = arith.constant 0 : i32
    %c0_i32_1 = arith.constant 0 : i32
    return %arg0, %c0_i32, %c0_i32_0 : i32, i32, i32
  }
}

</mosaic_0001>

<bundles_post_ra>
// kernel: tpu_custom_call.1
= control target key start
LH: loop header
LB: loop body
LE: loop exit
PB: predicated region body
PF: predicated region fallthrough
CT: control target
= control target key end

     0   :  { %9 = vsyncpa [#allocation4], 0  ;;  %s181_s0 = inlined_call_operand.hbm [shape: f32[16,32], index: 0, kind: input, shape index: {}]   ;;  %s182_s1 = inlined_call_operand.vmem [shape: f32[1,32], index: 1, kind: input, shape index: {}]   ;;  %s183_s2 = inlined_call_operand.<no memory space> [shape: f32[1], index: 2, kind: input, shape index: {}]   ;;  %s184_s3 = inlined_call_operand.hbm [shape: f32[1,1,16], index: 3, kind: output, shape index: {}]  }
   0x1   :  { %10 = vsyncpa [#allocation5], 0  ;;  %s15_s14 = sshll.u32 %s181_s0, 4  ;;  %s145_s15 = smov [#allocation3]   ;;  %s16_s14 = int_to_ptr.hbm [resolvable:$true] %s15_s14 }
   0x2   :  { %s17_s16 = sshll.u32 %s145_s15, 4  ;;  %s146_s17 = smov 128   ;;  %s18_s16 = int_to_ptr.vmem [resolvable:$true] %s17_s16 }
   0x3   :  { %s147_s18 = smov 8  }
   0x4   :  { %23 = dma.hbm_to_vmem [thread:$0]  %s16_s14, 256, %s18_s16, [#allocation4], %s146_s17, %s146_s17, %s147_s18  }
   0x5   :  { %141 = dma.done.wait [#allocation4], 256  }
   0x6   :  { %142 = vsyncadd [#allocation4], 4294967040  ;;  %vm37_vm0 = vcmask 261120   ;;  %v34_v0 = vld [vmem:[#allocation3 + $0x8] sm:$0xff]  ;;  %v33_v1 = vld [vmem:[#allocation3] sm:$0xff]  ;;  %v36_v3 = vstv %s183_s2  ;;  %s148_s22 = smov [#allocation6]  }
   0x7   :  { %86 = vmatpush.xpose.msk.msra.mxu0 %vm37_vm0, %v34_v0  ;;  %v32_v2 = vld [vmem:[%s182_s1] sm:$0x1]  ;;  %s74_s23 = sshll.u32 %s148_s22, 4  ;;  %s76_s26 = sshll.u32 %s184_s3, 4  ;;  %vm67_vm1 = vcmask 122880   ;;  %s75_s23 = int_to_ptr.vmem [resolvable:$true] %s74_s23  ;;  %s77_s26 = int_to_ptr.hbm [resolvable:$true] %s76_s26 }
   0xb   :  { %87 = vmatpush.xpose.msk.msra.mxu0 %vm37_vm0, %v33_v1 }
   0xe   :  { %88 = vmatmul.msk.f32.vlgmr.msra.gmra.mxu0 %vm37_vm0, %v32_v2 }
  0x8b   :  { %v64_v4 = vpop.f32.mrf.mxu0 }
  0x8c   :  { %v65_v5 = vadd.f32 %v64_v4, %v36_v3 }
  0x8e   :  { %68 = vst.msk [vmem:[#allocation6] sm:$0x1] %vm67_vm1, %v65_v5 }
  0x8f   :  { %79 = dma.vmem_to_hbm [thread:$0]  %s75_s23, 16, %s77_s26, [#allocation5]  }
  0x90   :  { %143 = dma.done.wait [#allocation5], 16  }
  0x91   :  { %144 = vsyncadd [#allocation5], 4294967280 }
  0x92   :  { %84 = vsyncpa [#allocation4], 1 }
  0x93   :  { %85 = vsyncpa [#allocation5], 1 }

</bundles_post_ra>
